<compile_context>
chip_gen: v6e
topology: v6e:2x2x1
jax: 0.10.0
libtpu: 0.0.40
codegen_flags: <defaults>
</compile_context>

<pallas_src>
import functools

import jax
import jax.numpy as jnp
from jax.experimental import pallas as pl
from jax.experimental.pallas import tpu as pltpu

LRELU_SLOPE = 0.1


def _round_up(x, m):
    return ((x + m - 1) // m) * m


# ----------------------------------------------------------------------------
# Pallas kernel: fused  (patches @ W) + bias  [+ LeakyReLU]
#   patches block: (tm, K)   bf16   (row tile, true K)
#   weight  block: (K, N)    bf16   (grid-invariant, stays resident)
#   bias    block: (1, N)    f32
#   output  block: (tm, N)   f32
# ----------------------------------------------------------------------------
def _conv_matmul_kernel(p_ref, w_ref, b_ref, o_ref, *, apply_act):
    acc = jnp.dot(p_ref[...], w_ref[...], preferred_element_type=jnp.float32)
    acc = acc + b_ref[...]                       # (1, N) broadcast over rows
    if apply_act:
        acc = jnp.where(acc >= 0, acc, LRELU_SLOPE * acc)
    o_ref[...] = acc.astype(o_ref.dtype)


def _pallas_matmul_bias_act(patches, w, b, apply_act, tm_max=512):
    """patches: (M, K) bf16, w: (K, N) bf16, b: (1, N) f32 -> (M, N) f32."""
    M, K = patches.shape
    _, N = w.shape

    # Row-tile size: 512 for large M (>=85% of HBM roofline with pipelining),
    # or the full (8-aligned) extent for small M so the block equals the array.
    tm = min(tm_max, _round_up(M, 8))
    Mp = pl.cdiv(M, tm) * tm
    if Mp != M:
        patches = jnp.pad(patches, ((0, Mp - M), (0, 0)))

    cost = pl.CostEstimate(
        flops=2 * M * K * N,
        transcendentals=0,
        bytes_accessed=M * K * 2 + K * N * 2 + N * 4 + M * N * 4,
    )

    out = pl.pallas_call(
        functools.partial(_conv_matmul_kernel, apply_act=apply_act),
        out_shape=jax.ShapeDtypeStruct((Mp, N), jnp.float32),
        grid=(Mp // tm,),
        in_specs=[
            pl.BlockSpec((tm, K), lambda i: (i, 0)),   # row tile of patches
            pl.BlockSpec((K, N), lambda i: (0, 0)),    # weight: resident
            pl.BlockSpec((1, N), lambda i: (0, 0)),    # bias: resident
        ],
        out_specs=pl.BlockSpec((tm, N), lambda i: (i, 0)),
        compiler_params=pltpu.CompilerParams(
            dimension_semantics=("parallel",),         # shard row tiles on v7x's 2 TCs
            vmem_limit_bytes=32 * 1024 * 1024,         # safe on v5e/v6e/v7x
        ),
        cost_estimate=cost,
    )(patches, w, b)

    return out[:M] if Mp != M else out


# ----------------------------------------------------------------------------
# Conv2d with kernel (KH, 1), stride (stride, 1), padding (padding, 0),
# channels-last activations (B, H, W, C) between layers.
# ----------------------------------------------------------------------------
def conv2d_kx1(x, weight, bias, stride, padding, apply_act):
    """x: (B, H, W, Cin) f32; weight: (Cout, Cin, KH); bias: (Cout,)."""
    B, H, W, Cin = x.shape
    Cout, _, KH = weight.shape

    x_bf = x.astype(jnp.bfloat16)
    x_pad = jnp.pad(x_bf, ((0, 0), (padding, padding), (0, 0), (0, 0)))
    Hp = H + 2 * padding
    H_out = (Hp - KH) // stride + 1

    # im2col along H; taps concatenated along the channel (lane) dim,
    # K-index order = kh * Cin + cin  (matched by the weight transpose below).
    cols = [
        x_pad[:, kh: kh + stride * (H_out - 1) + 1: stride, :, :]
        for kh in range(KH)
    ]                                               # each (B, H_out, W, Cin)
    patches = jnp.concatenate(cols, axis=-1)        # (B, H_out, W, KH*Cin)
    patches = patches.reshape(B * H_out * W, KH * Cin)

    w2 = weight.transpose(2, 1, 0).reshape(KH * Cin, Cout).astype(jnp.bfloat16)
    b2 = bias.reshape(1, Cout).astype(jnp.float32)

    out = _pallas_matmul_bias_act(patches, w2, b2, apply_act)   # (M, Cout) f32
    return out.reshape(B, H_out, W, Cout)           # stays channels-last


# ----------------------------------------------------------------------------
# DiscriminatorP forward
# ----------------------------------------------------------------------------
def discriminator_p_forward(x, period, layers):
    """x: (B, C, T).  layers: list of
       (weight (Cout,Cin,KH), bias (Cout,), stride, padding, apply_act, should_fmap)."""
    b, c, t = x.shape
    if t % period != 0:
        n_pad = period - t % period
        x = jnp.pad(x, ((0, 0), (0, 0), (0, n_pad)), mode="reflect")
        t = t + n_pad

    # NCHW view -> channels-last once; activations stay (B, H, W, C) between layers.
    x = x.reshape(b, c, t // period, period).transpose(0, 2, 3, 1)   # (B, H, W, C)

    fmap = []
    for (w, bias, stride, padding, apply_act, should_fmap) in layers:
        x = conv2d_kx1(x, w, bias, stride, padding, apply_act)
        if should_fmap:
            fmap.append(jnp.transpose(x, (0, 3, 1, 2)))   # emit NCHW like PyTorch

    x_nchw = jnp.transpose(x, (0, 3, 1, 2))          # (B, Cout, H, W)
    return x_nchw.reshape(b, -1), fmap               # torch.flatten(x, 1, -1)


# ----------------------------------------------------------------------------
# Deterministic synthetic parameters (layers_config is data-driven in the
# original repo; we instantiate a small HiFi-GAN-style config here).
# ----------------------------------------------------------------------------
def make_layers(key):
    # (cin, cout, KH, stride, padding, apply_leaky_relu, should_fmap)
    cfg = [
        (1, 4, 5, 3, 2, True, True),
        (4, 8, 5, 3, 2, True, True),
        (8, 1, 3, 1, 1, False, True),
    ]
    layers = []
    for i, (cin, cout, kh, st, pd, act, fm) in enumerate(cfg):
        kw, kb = jax.random.split(jax.random.fold_in(key, i))
        w = jax.random.normal(kw, (cout, cin, kh), jnp.float32) * 0.1
        b = jax.random.normal(kb, (cout,), jnp.float32) * 0.01
        layers.append((w, b, st, pd, act, fm))
    return layers


if __name__ == "__main__":
    key = jax.random.PRNGKey(0)
    k_in, k_par = jax.random.split(key)

    period = 4
    B, C, T = 2, 1, 30                      # T % period != 0 -> reflect pad
    x = jax.random.normal(k_in, (B, C, T), jnp.float32)

    layers = make_layers(k_par)

    out, fmap = discriminator_p_forward(x, period, layers)
    out = jax.block_until_ready(out)
    fmap = [jax.block_until_ready(f) for f in fmap]

    assert out.shape[0] == B and out.ndim == 2
    assert len(fmap) == 3
    assert all(f.ndim == 4 for f in fmap)   # NCHW fmaps, as in PyTorch
    print("KERNEL_OK")
</pallas_src>

<mosaic_0001>
module attributes {stable_mosaic.version = 11 : i64} {
  func.func @_conv_matmul_kernel(%arg0: i32, %arg1: memref<24x5xbf16, #tpu.memory_space<vmem>>, %arg2: memref<5x4xbf16, #tpu.memory_space<vmem>>, %arg3: memref<1x4xf32, #tpu.memory_space<vmem>>, %arg4: memref<24x4xf32, #tpu.memory_space<vmem>>) attributes {dimension_semantics = [#tpu.dimension_semantics<parallel>], iteration_bounds = array<i64: 1>, scalar_prefetch = 0 : i64, scratch_operands = 0 : i64, tpu.core_type = #tpu.core_type<tc>, window_params = [{transform_indices = @transform_0, window_bounds = array<i64: 24, 5>}, {pipeline_mode = #tpu.pipeline_mode<synchronous>, transform_indices = @transform_1, window_bounds = array<i64: 5, 4>}, {pipeline_mode = #tpu.pipeline_mode<synchronous>, transform_indices = @transform_2, window_bounds = array<i64: 1, 4>}, {transform_indices = @transform_3, window_bounds = array<i64: 24, 4>}]} {
    %c0 = arith.constant 0 : index
    %c0_0 = arith.constant 0 : index
    %0 = vector.load %arg1[%c0, %c0_0] : memref<24x5xbf16, #tpu.memory_space<vmem>>, vector<24x5xbf16>
    %c0_1 = arith.constant 0 : index
    %c0_2 = arith.constant 0 : index
    %1 = vector.load %arg2[%c0_1, %c0_2] : memref<5x4xbf16, #tpu.memory_space<vmem>>, vector<5x4xbf16>
    %cst = arith.constant dense<0.000000e+00> : vector<24x4xf32>
    %2 = tpu.matmul %0, %1, %cst {dimension_numbers = #tpu.dot_dimension_numbers<[1], [0], [0], [1], [0, 0, 1, 1], [], []>} : vector<24x5xbf16>, vector<5x4xbf16>, vector<24x4xf32> -> vector<24x4xf32>
    %c0_3 = arith.constant 0 : index
    %c0_4 = arith.constant 0 : index
    %3 = vector.load %arg3[%c0_3, %c0_4] : memref<1x4xf32, #tpu.memory_space<vmem>>, vector<1x4xf32>
    %4 = vector.broadcast %3 : vector<1x4xf32> to vector<24x4xf32>
    %5 = arith.addf %2, %4 : vector<24x4xf32>
    %cst_5 = arith.constant 0.000000e+00 : f32
    %6 = vector.broadcast %cst_5 : f32 to vector<24x4xf32>
    %7 = arith.cmpf oge, %5, %6 : vector<24x4xf32>
    %cst_6 = arith.constant 1.000000e-01 : f32
    %8 = vector.broadcast %cst_6 : f32 to vector<24x4xf32>
    %9 = arith.mulf %8, %5 : vector<24x4xf32>
    %10 = arith.select %7, %5, %9 : vector<24x4xi1>, vector<24x4xf32>
    %c0_7 = arith.constant 0 : index
    %c0_8 = arith.constant 0 : index
    %11 = vector.load %arg4[%c0_7, %c0_8] : memref<24x4xf32, #tpu.memory_space<vmem>>, vector<24x4xf32>
    tpu.vector_store %arg4[%c0_7, %c0_8], %10 {strides = array<i32>} : memref<24x4xf32, #tpu.memory_space<vmem>>, vector<24x4xf32>,
    return
  }
  func.func @transform_0(%arg0: i32) -> (i32, i32) {
    %c0_i32 = arith.constant 0 : i32
    %c0_i32_0 = arith.constant 0 : i32
    return %arg0, %c0_i32 : i32, i32
  }
  func.func @transform_1(%arg0: i32) -> (i32, i32) {
    %c0_i32 = arith.constant 0 : i32
    %c0_i32_0 = arith.constant 0 : i32
    %c0_i32_1 = arith.constant 0 : i32
    return %c0_i32, %c0_i32_0 : i32, i32
  }
  func.func @transform_2(%arg0: i32) -> (i32, i32) {
    %c0_i32 = arith.constant 0 : i32
    %c0_i32_0 = arith.constant 0 : i32
    %c0_i32_1 = arith.constant 0 : i32
    return %c0_i32, %c0_i32_0 : i32, i32
  }
  func.func @transform_3(%arg0: i32) -> (i32, i32) {
    %c0_i32 = arith.constant 0 : i32
    %c0_i32_0 = arith.constant 0 : i32
    return %arg0, %c0_i32 : i32, i32
  }
}

</mosaic_0001>

<bundles_post_ra>
// kernel: tpu_custom_call.1
= control target key start
LH: loop header
LB: loop body
LE: loop exit
PB: predicated region body
PF: predicated region fallthrough
CT: control target
= control target key end

     0   :  { %vm41_vm0 = vcmask 1041408   ;;  %vm42_vm1 = vcmask 1042432   ;;  %vm34_vm2 = vcmask 39936   ;;  %v130_v1 = vmov 65535   ;;  %s172_s1 = inlined_call_operand.vmem [shape: bf16[5,4], index: 1, kind: input, shape index: {}]   ;;  %s173_s0 = inlined_call_operand.vmem [shape: bf16[24,5], index: 0, kind: input, shape index: {}]   ;;  %s174_s2 = inlined_call_operand.vmem [shape: f32[1,4], index: 2, kind: input, shape index: {}]   ;;  %s175_s3 = inlined_call_operand.vmem [shape: f32[24,4], index: 3, kind: output, shape index: {}]  }
   0x1   :  { %v18_v0 = vld [vmem:[%s172_s1] sm:$0x7]  ;;  %v43_v2 = vsel %vm41_vm0, 4294967295, %v130_v1  ;;  %v129_v6 = vld [vmem:[%s173_s0 + $0x8] ss:$0 sps:$4 sm:$0xff]   ;;  %vm105_vm4 = vcmask 31744  }
   0x2   :  { %v128_v3 = vld [vmem:[%s173_s0] sm:$0xff]   ;;  %v44_v4 = vsel %vm42_vm1, %v43_v2, 0 }
   0x3   :  { %v46_v5 = vand.u32 %v44_v4, %v18_v0  ;;  %123 = vmatprep.mubr.msk.bf16.mxu0 %vm34_vm2, %v128_v3  ;;  %v113_v7 = vld [vmem:[%s174_s2] ss:$0 sm:$0xff] }
   0x5   :  { %121 = vmatprep.subr.bf16.mxu0 %v46_v5 }
   0x6   :  { %122 = vmatpush3.bf16.msra.mxu0 %v46_v5 }
   0x9   :  { %124 = vmatmul.mubr.msk.bf16.vlgmr.msra.gmra.mxu0 %vm34_vm2, %v129_v6 }
  0xc9   :  { %v125_v8 = vpop.f32.mrf.mxu0 }
  0xca   :  { %v91_v9 = vadd.f32 %v125_v8, %v113_v7 }
  0xcb   :  { %v82_v10 = vpop.f32.mrf.mxu0 }
  0xcc   :  { %vm98_vm3 = vcmp.ge.f32.partialorder %v91_v9, 0.0  ;;  %v101_v11 = vmul.f32 0.1, %v91_v9  ;;  %v83_v12 = vadd.f32 %v113_v7, %v82_v10 }
  0xcd   :  { %v126_v13 = vpop.f32.mrf.mxu0 }
  0xce   :  { %v104_v14 = vsel %vm98_vm3, %v91_v9, %v101_v11  ;;  %vm96_vm5 = vcmp.ge.f32.partialorder %v83_v12, 0.0  ;;  %v99_v15 = vmul.f32 0.1, %v83_v12 }
  0xcf   :  { %108 = vst.msk [vmem:[%s175_s3 + $0x10] sm:$0xff] %vm105_vm4, %v104_v14  ;;  %v85_v16 = vpop.f32.mrf.mxu0 }
  0xd0   :  { %v102_v17 = vsel %vm96_vm5, %v83_v12, %v99_v15  ;;  %v86_v18 = vadd.f32 %v113_v7, %v85_v16 }
  0xd1   :  { %106 = vst.msk [vmem:[%s175_s3] sm:$0xff] %vm105_vm4, %v102_v17 }
  0xd2   :  { %vm97_vm6 = vcmp.ge.f32.partialorder %v86_v18, 0.0  ;;  %v100_v19 = vmul.f32 0.1, %v86_v18 }
  0xd4   :  { %v103_v20 = vsel %vm97_vm6, %v86_v18, %v100_v19 }
  0xd5   :  { %107 = vst.msk [vmem:[%s175_s3 + $0x8] sm:$0xff] %vm105_vm4, %v103_v20 }

</bundles_post_ra>
